<compile_context>
chip_gen: v6e
topology: v6e:2x2x1
jax: 0.10.0
libtpu: 0.0.40
codegen_flags: <defaults>
</compile_context>

<pallas_src>
import functools

import jax
import jax.numpy as jnp
from jax.experimental import pallas as pl
from jax.experimental.pallas import tpu as pltpu


def _round_up(n, m):
    return ((n + m - 1) // m) * m


def _mlp_kernel(x_ref, w1_ref, b1_ref, w2_ref, b2_ref, o_ref):
    # In-kernel f32 -> bf16 cast of the (tiny) activation tile (VPU, ~free).
    x = x_ref[...].astype(jnp.bfloat16)
    # fc1: (B, D) bf16 @ (D, H_pad) bf16 -> f32 accumulation on the MXU.
    h = jnp.dot(x, w1_ref[...], preferred_element_type=jnp.float32)
    h = h + b1_ref[...]                      # bias add kept in f32
    # Dropout(p=0.2) -> identity (eval mode).
    # fc2: (B, H_pad) bf16 @ (H_pad, C_pad) bf16 -> f32 accumulation.
    out = jnp.dot(h.astype(jnp.bfloat16), w2_ref[...],
                  preferred_element_type=jnp.float32)
    o_ref[...] = out + b2_ref[...]           # lane-dense (multiple-of-128) store


def pack_params(w1, b1, w2, b2):
    """One-time conversion of parameters into the kernel's padded layouts.

    Expects (in, out)-oriented weights (i.e. transposed vs. PyTorch's
    (out, in) storage): w1 (D, H), b1 (1, H), w2 (H, C), b2 (1, C).
    Hidden is padded to a multiple of 128 (lane-dense fc1 output / fc2
    contraction), classes to 128 (lane-dense output store). Zero padding is
    exact for matmul + bias. Call this ONCE; reuse the result every forward.
    """
    D, H = w1.shape
    C = w2.shape[1]
    H_pad = _round_up(H, 128)
    C_pad = _round_up(C, 128)
    w1_p = jnp.zeros((D, H_pad), jnp.bfloat16).at[:, :H].set(w1.astype(jnp.bfloat16))
    b1_p = jnp.zeros((1, H_pad), jnp.float32).at[:, :H].set(b1.astype(jnp.float32))
    w2_p = jnp.zeros((H_pad, C_pad), jnp.bfloat16).at[:H, :C].set(w2.astype(jnp.bfloat16))
    b2_p = jnp.zeros((1, C_pad), jnp.float32).at[:, :C].set(b2.astype(jnp.float32))
    return w1_p, b1_p, w2_p, b2_p


@functools.partial(jax.jit, static_argnames=("num_classes",))
def linear_mnist_net(x, w1_p, b1_p, w2_p, b2_p, num_classes=10):
    """x: (B, D) f32, unpadded. w*_p/b*_p: pre-packed params from pack_params()."""
    B = x.shape[0]
    C_pad = w2_p.shape[1]
    out = pl.pallas_call(
        _mlp_kernel,
        out_shape=jax.ShapeDtypeStruct((B, C_pad), jnp.float32),
        in_specs=[pl.BlockSpec(memory_space=pltpu.MemorySpace.VMEM)] * 5,
        out_specs=pl.BlockSpec(memory_space=pltpu.MemorySpace.VMEM),
    )(x, w1_p, b1_p, w2_p, b2_p)
    return out[:, :num_classes]


def init_params(key, input_size=28 * 28, hidden_size=500, num_classes=10):
    """Deterministic init mimicking nn.Linear's U(-1/sqrt(fan_in), 1/sqrt(fan_in))."""
    k1, k2, k3, k4 = jax.random.split(key, 4)
    lim1 = 1.0 / jnp.sqrt(jnp.float32(input_size))
    lim2 = 1.0 / jnp.sqrt(jnp.float32(hidden_size))
    w1 = jax.random.uniform(k1, (input_size, hidden_size), jnp.float32, -lim1, lim1)
    b1 = jax.random.uniform(k2, (1, hidden_size), jnp.float32, -lim1, lim1)
    w2 = jax.random.uniform(k3, (hidden_size, num_classes), jnp.float32, -lim2, lim2)
    b2 = jax.random.uniform(k4, (1, num_classes), jnp.float32, -lim2, lim2)
    return w1, b1, w2, b2


if __name__ == "__main__":
    key = jax.random.PRNGKey(0)
    kx, kp = jax.random.split(key)

    batch = 2
    input_size = 28 * 28
    hidden_size = 500
    num_classes = 10

    x = jax.random.normal(kx, (batch, input_size), jnp.float32)
    w1, b1, w2, b2 = init_params(kp, input_size, hidden_size, num_classes)

    # Pack weights ONCE (hoisted out of the per-call path).
    packed = pack_params(w1, b1, w2, b2)
    packed = jax.block_until_ready(packed)

    out = linear_mnist_net(x, *packed, num_classes=num_classes)
    out = jax.block_until_ready(out)

    # Reference in plain JAX along the SAME numeric path (bf16 operands,
    # f32 accumulation) — dropout is identity in eval mode.
    xb = x.astype(jnp.bfloat16).astype(jnp.float32)
    w1b = w1.astype(jnp.bfloat16).astype(jnp.float32)
    w2b = w2.astype(jnp.bfloat16).astype(jnp.float32)
    h_ref = xb @ w1b + b1
    h_ref = h_ref.astype(jnp.bfloat16).astype(jnp.float32)
    ref = h_ref @ w2b + b2

    assert out.shape == (batch, num_classes)
    assert jnp.allclose(out, ref, atol=2e-2, rtol=2e-2)

    print("KERNEL_OK")
</pallas_src>

<mosaic_0001>
module attributes {stable_mosaic.version = 11 : i64} {
  func.func @_mlp_kernel(%arg0: memref<2x784xf32, #tpu.memory_space<vmem>>, %arg1: memref<784x512xbf16, #tpu.memory_space<vmem>>, %arg2: memref<1x512xf32, #tpu.memory_space<vmem>>, %arg3: memref<512x128xbf16, #tpu.memory_space<vmem>>, %arg4: memref<1x128xf32, #tpu.memory_space<vmem>>, %arg5: memref<2x128xf32, #tpu.memory_space<vmem>>) attributes {dimension_semantics = [], scalar_prefetch = 0 : i64, scratch_operands = 0 : i64, tpu.core_type = #tpu.core_type<tc>} {
    %c0 = arith.constant 0 : index
    %c0_0 = arith.constant 0 : index
    %0 = vector.load %arg0[%c0, %c0_0] : memref<2x784xf32, #tpu.memory_space<vmem>>, vector<2x784xf32>
    %1 = arith.truncf %0 : vector<2x784xf32> to vector<2x784xbf16>
    %c0_1 = arith.constant 0 : index
    %c0_2 = arith.constant 0 : index
    %2 = vector.load %arg1[%c0_1, %c0_2] : memref<784x512xbf16, #tpu.memory_space<vmem>>, vector<784x512xbf16>
    %cst = arith.constant dense<0.000000e+00> : vector<2x512xf32>
    %3 = tpu.matmul %1, %2, %cst {dimension_numbers = #tpu.dot_dimension_numbers<[1], [0], [0], [1], [0, 0, 1, 1], [], []>} : vector<2x784xbf16>, vector<784x512xbf16>, vector<2x512xf32> -> vector<2x512xf32>
    %c0_3 = arith.constant 0 : index
    %c0_4 = arith.constant 0 : index
    %4 = vector.load %arg2[%c0_3, %c0_4] : memref<1x512xf32, #tpu.memory_space<vmem>>, vector<1x512xf32>
    %5 = vector.broadcast %4 : vector<1x512xf32> to vector<2x512xf32>
    %6 = arith.addf %3, %5 : vector<2x512xf32>
    %7 = arith.truncf %6 : vector<2x512xf32> to vector<2x512xbf16>
    %c0_5 = arith.constant 0 : index
    %c0_6 = arith.constant 0 : index
    %8 = vector.load %arg3[%c0_5, %c0_6] : memref<512x128xbf16, #tpu.memory_space<vmem>>, vector<512x128xbf16>
    %cst_7 = arith.constant dense<0.000000e+00> : vector<2x128xf32>
    %9 = tpu.matmul %7, %8, %cst_7 {dimension_numbers = #tpu.dot_dimension_numbers<[1], [0], [0], [1], [0, 0, 1, 1], [], []>} : vector<2x512xbf16>, vector<512x128xbf16>, vector<2x128xf32> -> vector<2x128xf32>
    %c0_8 = arith.constant 0 : index
    %c0_9 = arith.constant 0 : index
    %10 = vector.load %arg4[%c0_8, %c0_9] : memref<1x128xf32, #tpu.memory_space<vmem>>, vector<1x128xf32>
    %11 = vector.broadcast %10 : vector<1x128xf32> to vector<2x128xf32>
    %12 = arith.addf %9, %11 : vector<2x128xf32>
    %c0_10 = arith.constant 0 : index
    %c0_11 = arith.constant 0 : index
    %13 = vector.load %arg5[%c0_10, %c0_11] : memref<2x128xf32, #tpu.memory_space<vmem>>, vector<2x128xf32>
    tpu.vector_store %arg5[%c0_10, %c0_11], %12 {strides = array<i32>} : memref<2x128xf32, #tpu.memory_space<vmem>>, vector<2x128xf32>,
    return
  }
}

</mosaic_0001>

<bundles_post_ra>
// kernel: linear_mnist_net.1
= control target key start
LH: loop header
LB: loop body
LE: loop exit
PB: predicated region body
PF: predicated region fallthrough
CT: control target
= control target key end

     0   :  { %10 = vsyncpa [#allocation3], 0  ;;  %s2851_s0 = inlined_call_operand.hbm [shape: f32[2,784], index: 0, kind: input, shape index: {}]   ;;  %s2852_s1 = inlined_call_operand.hbm [shape: bf16[784,512], index: 1, kind: input, shape index: {}]   ;;  %s2853_s2 = inlined_call_operand.hbm [shape: f32[1,512], index: 2, kind: input, shape index: {}]   ;;  %s2854_s3 = inlined_call_operand.hbm [shape: bf16[512,128], index: 3, kind: input, shape index: {}]   ;;  %s2855_s4 = inlined_call_operand.vmem [shape: f32[1,128], index: 4, kind: input, shape index: {}]   ;;  %s2856_s5 = inlined_call_operand.hbm [shape: f32[2,128], index: 5, kind: output, shape index: {}]  }
   0x1   :  { %11 = vsyncpa [#allocation6], 0 }
   0x2   :  { %12 = vsyncpa [#allocation9], 0 }
   0x3   :  { %13 = vsyncpa [#allocation4], 0  ;;  %s2741_s18 = smov [#allocation5]  }
   0x4   :  { %s29_s19 = sshll.u32 %s2741_s18, 4  ;;  %s30_s19 = int_to_ptr.vmem [resolvable:$true] %s29_s19 }
   0x5   :  { %s2641_s20 = scalar_lea.vmem %s30_s19, 25088  ;;  %p2646_p1 = scmp.lt.s32.totalorder %s30_s19, %s30_s19 }
   0x6   :  { %p2642_p0 = scmp.ne.s32.totalorder %s30_s19, %s2641_s20  ;;  %p2647_p2 = scmp.lt.s32.totalorder %s2641_s20, %s2641_s20 }
   0x8   :  { %p2648_p3 = por %p2647_p2, %p2646_p1 }
   0xa   :  { %p2649_p4 = pnand %p2648_p3, %p2642_p0 }
   0xc   :  { %2652 = shalt.err (!%p2649_p4)
}
   0xd   :  { %s2742_s21 = smov 256   ;;  %s2743_s22 = smov 16  }
   0xe   :  { %35 = dma.hbm_to_vmem [thread:$0]  %s2852_s1, 25088, %s30_s19, [#allocation6], %s2742_s21, %s2742_s21, %s2743_s22  }
   0xf   :  { %s2744_s25 = smov [#allocation2]   ;;  %s2745_s27 = smov [#allocation7]  }
  0x10   :  { %s20_s26 = sshll.u32 %s2744_s25, 4  ;;  %s42_s28 = sshll.u32 %s2745_s27, 4  ;;  %s21_s26 = int_to_ptr.vmem [resolvable:$true] %s20_s26  ;;  %s43_s28 = int_to_ptr.vmem [resolvable:$true] %s42_s28 }
  0x11   :  { %s2661_s29 = scalar_lea.vmem %s21_s26, 224  ;;  %p2666_p6 = scmp.lt.s32.totalorder %s21_s26, %s21_s26 }
  0x12   :  { %p2662_p5 = scmp.ne.s32.totalorder %s21_s26, %s2661_s29  ;;  %p2667_p7 = scmp.lt.s32.totalorder %s2661_s29, %s2661_s29 }
  0x14   :  { %p2668_p8 = por %p2667_p7, %p2666_p6 }
  0x16   :  { %p2669_p9 = pnand %p2668_p8, %p2662_p5 }
  0x18   :  { %2672 = shalt.err (!%p2669_p9)
}
  0x19   :  { %23 = dma.hbm_to_vmem [thread:$0]  %s2851_s0, 224, %s21_s26, [#allocation3]  }
  0x1a   :  { %s2681_s7 = scalar_lea.vmem %s43_s28, 64  ;;  %p2686_p11 = scmp.lt.s32.totalorder %s43_s28, %s43_s28 }
  0x1b   :  { %p2682_p10 = scmp.ne.s32.totalorder %s43_s28, %s2681_s7  ;;  %p2687_p12 = scmp.lt.s32.totalorder %s2681_s7, %s2681_s7 }
  0x1d   :  { %p2688_p13 = por %p2687_p12, %p2686_p11 }
  0x1f   :  { %p2689_p0 = pnand %p2688_p13, %p2682_p10 }
  0x21   :  { %2692 = shalt.err (!%p2689_p0)
}
  0x22   :  { %45 = dma.hbm_to_vmem [thread:$0]  %s2853_s2, 64, %s43_s28, [#allocation6]  }
  0x23   :  { %s2746_s9 = smov [#allocation8]  }
  0x24   :  { %s51_s10 = sshll.u32 %s2746_s9, 4  ;;  %s52_s10 = int_to_ptr.vmem [resolvable:$true] %s51_s10 }
  0x25   :  { %s2701_s11 = scalar_lea.vmem %s52_s10, 4096  ;;  %p2706_p2 = scmp.lt.s32.totalorder %s52_s10, %s52_s10 }
  0x26   :  { %p2702_p1 = scmp.ne.s32.totalorder %s52_s10, %s2701_s11  ;;  %p2707_p3 = scmp.lt.s32.totalorder %s2701_s11, %s2701_s11 }
  0x28   :  { %p2708_p4 = por %p2707_p3, %p2706_p2 }
  0x2a   :  { %p2709_p5 = pnand %p2708_p4, %p2702_p1 }
  0x2c   :  { %2712 = shalt.err (!%p2709_p5)
}
  0x2d   :  { %s2747_s0 = smov 64   ;;  %s2748_s12 = smov 4  }
  0x2e   :  { %57 = dma.hbm_to_vmem [thread:$0]  %s2854_s3, 4096, %s52_s10, [#allocation9], %s2747_s0, %s2747_s0, %s2748_s12  }
  0x2f   :  { %2733 = dma.done.wait [#allocation3], 224  }
  0x30   :  { %2734 = vsyncadd [#allocation3], 4294967072 }
  0x31   :  { %2735 = dma.done.wait [#allocation6], 25152  }
  0x32   :  { %2736 = vsyncadd [#allocation6], 4294942144 }
  0x33   :  { %2737 = dma.done.wait [#allocation9], 4096  }
  0x34   :  { %2738 = vsyncadd [#allocation9], 4294963200  ;;  %v2305_v0 = vld [vmem:[#allocation5 + $0xe4] ss:$16 sps:$4 sm:$0xff]   ;;  %v2309_v2 = vld [vmem:[#allocation5 + $0xe0] ss:$16 sps:$4 sm:$0xff]   ;;  %v81_v38 = vlaneseq }
  0x35   :  { %v2307_v1 = vld [vmem:[#allocation5 + $0x2e4] ss:$16 sps:$4 sm:$0xff]   ;;  %1326 = vmatprep.subr.bf16.mxu0 %v2305_v0  ;;  %v2310_v3 = vld [vmem:[#allocation5 + $0x2e0] ss:$16 sps:$4 sm:$0xff]   ;;  %v2749_v36 = vmov 1983009808  }
  0x36   :  { %1367 = vmatprep.subr.bf16.mxu1 %v2307_v1  ;;  %v2311_v4 = vld [vmem:[#allocation5 + $0xc4] ss:$16 sps:$4 sm:$0xff]   ;;  %1327 = vmatpush1.bf16.msra.mxu0 %v2309_v2  ;;  %v2315_v6 = vld [vmem:[#allocation5 + $0xc0] ss:$16 sps:$4 sm:$0xff]   ;;  %v79_v37 = vunpack.c.l.s4 %v2749_v36  ;;  %v2794_v43 = vshrl.u32 %v81_v38, 7  ;;  %vm1322_vm0 = vcmask 130048  }
  0x37   :  { %1368 = vmatpush1.bf16.msra.mxu1 %v2310_v3  ;;  %v2313_v5 = vld [vmem:[#allocation5 + $0x2c4] ss:$16 sps:$4 sm:$0xff]   ;;  %1328 = vmatprep.subr.bf16.mxu0 %v2311_v4  ;;  %v2316_v7 = vld [vmem:[#allocation5 + $0x2c0] ss:$16 sps:$4 sm:$0xff]   ;;  %v2418_v36 = vld [vmem:[#allocation5 + $0xc8] ss:$16 sps:$4 sm:$0xff]  }
  0x38   :  { %1369 = vmatprep.subr.bf16.mxu1 %v2313_v5  ;;  %v2317_v8 = vld [vmem:[#allocation5 + $0xa4] ss:$16 sps:$4 sm:$0xff]   ;;  %v2321_v10 = vld [vmem:[#allocation5 + $0xa0] ss:$16 sps:$4 sm:$0xff]   ;;  %v80_v42 = vunpack.c.0.s8 %v79_v37  ;;  %v2426_v38 = vld [vmem:[#allocation5 + $0xac] ss:$16 sps:$4 sm:$0xff]  }
  0x39   :  { %v2319_v9 = vld [vmem:[#allocation5 + $0x2a4] ss:$16 sps:$4 sm:$0xff]   ;;  %v2322_v11 = vld [vmem:[#allocation5 + $0x2a0] ss:$16 sps:$4 sm:$0xff]   ;;  %s2751_s15 = smov [#allocation10]  }
  0x3a   :  { %1329 = vmatpush1.bf16.msra.mxu0 %v2315_v6  ;;  %v2323_v12 = vld [vmem:[#allocation5 + $0x84] ss:$16 sps:$4 sm:$0xff]   ;;  %v2327_v14 = vld [vmem:[#allocation5 + $0x80] ss:$16 sps:$4 sm:$0xff]   ;;  %v2797_v49 = vsub.s32 %v80_v42, %v2794_v43  ;;  %v2432_v42 = vld [vmem:[#allocation5 + $0x8c] ss:$16 sps:$4 sm:$0xff]  }
  0x3b   :  { %1370 = vmatpush1.bf16.msra.mxu1 %v2316_v7  ;;  %1330 = vmatprep.subr.bf16.mxu0 %v2317_v8  ;;  %v2325_v13 = vld [vmem:[#allocation5 + $0x284] ss:$16 sps:$4 sm:$0xff]   ;;  %v2328_v15 = vld [vmem:[#allocation5 + $0x280] ss:$16 sps:$4 sm:$0xff]   ;;  %s2008_s16 = sshll.u32 %s2751_s15, 4  ;;  %s2009_s16 = int_to_ptr.vmem [resolvable:$true] %s2008_s16 }
  0x3c   :  { %1371 = vmatprep.subr.bf16.mxu1 %v2319_v9  ;;  %v2329_v16 = vld [vmem:[#allocation5 + $0x64] ss:$16 sps:$4 sm:$0xff]   ;;  %v2333_v18 = vld [vmem:[#allocation5 + $0x60] ss:$16 sps:$4 sm:$0xff]   ;;  %s2713_s17 = scalar_lea.vmem %s2009_s16, 32  ;;  %p2718_p7 = scmp.lt.s32.totalorder %s2009_s16, %s2009_s16 }
  0x3d   :  { %v2331_v17 = vld [vmem:[#allocation5 + $0x264] ss:$16 sps:$4 sm:$0xff]   ;;  %v2334_v19 = vld [vmem:[#allocation5 + $0x260] ss:$16 sps:$4 sm:$0xff]   ;;  %p2714_p6 = scmp.ne.s32.totalorder %s2009_s16, %s2713_s17  ;;  %p2719_p8 = scmp.lt.s32.totalorder %s2713_s17, %s2713_s17 }
  0x3e   :  { %1331 = vmatpush1.bf16.msra.mxu0 %v2321_v10  ;;  %v2335_v20 = vld [vmem:[#allocation5 + $0x44] ss:$16 sps:$4 sm:$0xff]   ;;  %v2339_v22 = vld [vmem:[#allocation5 + $0x40] ss:$16 sps:$4 sm:$0xff]  }
  0x3f   :  { %1372 = vmatpush1.bf16.msra.mxu1 %v2322_v11  ;;  %1332 = vmatprep.subr.bf16.mxu0 %v2323_v12  ;;  %v2337_v21 = vld [vmem:[#allocation5 + $0x244] ss:$16 sps:$4 sm:$0xff]   ;;  %v2340_v23 = vld [vmem:[#allocation5 + $0x240] ss:$16 sps:$4 sm:$0xff]   ;;  %v74_v12 = vld [vmem:[#allocation2 + $0x8] sm:$0x3f]  ;;  %p2720_p9 = por %p2719_p8, %p2718_p7 }
  0x40   :  { %1373 = vmatprep.subr.bf16.mxu1 %v2325_v13  ;;  %v2341_v24 = vld [vmem:[#allocation5 + $0x24] ss:$16 sps:$4 sm:$0xff]   ;;  %v2345_v26 = vld [vmem:[#allocation5 + $0x20] ss:$16 sps:$4 sm:$0xff]   ;;  %v2808_v13 = vrot.slane %v74_v12, %v2797_v49 }
  0x41   :  { %v2343_v25 = vld [vmem:[#allocation5 + $0x224] ss:$16 sps:$4 sm:$0xff]   ;;  %v2346_v27 = vld [vmem:[#allocation5 + $0x220] ss:$16 sps:$4 sm:$0xff]   ;;  %p2721_p10 = pnand %p2720_p9, %p2714_p6 }
  0x42   :  { %1333 = vmatpush1.bf16.msra.mxu0 %v2327_v14  ;;  %v2347_v28 = vld [vmem:[#allocation5 + $0x4] ss:$16 sps:$4 sm:$0xff]   ;;  %v2351_v30 = vld [vmem:[#allocation5] ss:$16 sps:$4 sm:$0xff]  }
  0x43   :  { %1374 = vmatpush1.bf16.msra.mxu1 %v2328_v15  ;;  %1334 = vmatprep.subr.bf16.mxu0 %v2329_v16  ;;  %v2349_v29 = vld [vmem:[#allocation5 + $0x204] ss:$16 sps:$4 sm:$0xff]   ;;  %v2352_v31 = vld [vmem:[#allocation5 + $0x200] ss:$16 sps:$4 sm:$0xff]  }
  0x44   :  { %1375 = vmatprep.subr.bf16.mxu1 %v2331_v17  ;;  %v2353_v32 = vld [vmem:[#allocation5 + $0x1e4] ss:$16 sps:$4 sm:$0xff]   ;;  %v2357_v34 = vld [vmem:[#allocation5 + $0x1e0] ss:$16 sps:$4 sm:$0xff]  }
  0x45   :  { %v2355_v33 = vld [vmem:[#allocation5 + $0x3e4] ss:$16 sps:$4 sm:$0xff]   ;;  %v2358_v35 = vld [vmem:[#allocation5 + $0x3e0] ss:$16 sps:$4 sm:$0xff]  }
  0x46   :  { %1335 = vmatpush1.bf16.msra.mxu0 %v2333_v18  ;;  %v2359_v39 = vld [vmem:[#allocation5 + $0x1c4] ss:$16 sps:$4 sm:$0xff]   ;;  %v2363_v41 = vld [vmem:[#allocation5 + $0x1c0] ss:$16 sps:$4 sm:$0xff]   ;;  %v109_v18 = vcombine.high %v2808_v13, %v2808_v13 }
  0x47   :  { %1376 = vmatpush1.bf16.msra.mxu1 %v2334_v19  ;;  %1336 = vmatprep.subr.bf16.mxu0 %v2335_v20  ;;  %v2361_v40 = vld [vmem:[#allocation5 + $0x3c4] ss:$16 sps:$4 sm:$0xff]   ;;  %v2364_v44 = vld [vmem:[#allocation5 + $0x3c0] ss:$16 sps:$4 sm:$0xff]  }
  0x48   :  { %1377 = vmatprep.subr.bf16.mxu1 %v2337_v21  ;;  %v2365_v45 = vld [vmem:[#allocation5 + $0x1a4] ss:$16 sps:$4 sm:$0xff]   ;;  %v2369_v47 = vld [vmem:[#allocation5 + $0x1a0] ss:$16 sps:$4 sm:$0xff]   ;;  %v94_v21 = vcombine.high %v74_v12, %v74_v12  ;;  %v2480_v12 = vld [vmem:[#allocation5 + $0x18c] ss:$16 sps:$4 sm:$0xff]  }
  0x49   :  { %v2367_v46 = vld [vmem:[#allocation5 + $0x3a4] ss:$16 sps:$4 sm:$0xff]   ;;  %v2370_v48 = vld [vmem:[#allocation5 + $0x3a0] ss:$16 sps:$4 sm:$0xff]  }
  0x4a   :  { %1337 = vmatpush1.bf16.msra.mxu0 %v2339_v22  ;;  %v2371_v50 = vld [vmem:[#allocation5 + $0x184] ss:$16 sps:$4 sm:$0xff]   ;;  %v2375_v53 = vld [vmem:[#allocation5 + $0x180] ss:$16 sps:$4 sm:$0xff]  }
  0x4b   :  { %1378 = vmatpush1.bf16.msra.mxu1 %v2340_v23  ;;  %1338 = vmatprep.subr.bf16.mxu0 %v2341_v24  ;;  %v2373_v51 = vld [vmem:[#allocation5 + $0x384] ss:$16 sps:$4 sm:$0xff]   ;;  %v2376_v56 = vld [vmem:[#allocation5 + $0x380] ss:$16 sps:$4 sm:$0xff]  }
  0x4c   :  { %1379 = vmatprep.subr.bf16.mxu1 %v2343_v25  ;;  %v73_v52 = vld [vmem:[#allocation2] sm:$0xff]  ;;  %v2413_v25 = vld [vmem:[#allocation5 + $0xec] ss:$16 sps:$4 sm:$0xff]  }
  0x4d   :  { %v84_v54 = vrot.slane %v73_v52, %v2797_v49  ;;  %v77_v55 = vcombine.high %v73_v52, %v73_v52  ;;  %v2377_v57 = vld [vmem:[#allocation5 + $0x164] ss:$16 sps:$4 sm:$0xff]   ;;  %v2381_v61 = vld [vmem:[#allocation5 + $0x160] ss:$16 sps:$4 sm:$0xff]  }
  0x4e   :  { %1339 = vmatpush1.bf16.msra.mxu0 %v2345_v26  ;;  %v2379_v58 = vld [vmem:[#allocation5 + $0x364] ss:$16 sps:$4 sm:$0xff]   ;;  %v2382_v0 = vld [vmem:[#allocation5 + $0x360] ss:$16 sps:$4 sm:$0xff]   ;;  %v2816_v26 = vpack.c.bf16 %v109_v18, %v109_v18 }
  0x4f   :  { %1380 = vmatpush1.bf16.msra.mxu1 %v2346_v27  ;;  %1340 = vmatprep.subr.bf16.mxu0 %v2347_v28  ;;  %v92_v59 = vcombine.high %v84_v54, %v84_v54  ;;  %v91_v60 = vrot.slane %v77_v55, %v2797_v49  ;;  %v2383_v1 = vld [vmem:[#allocation5 + $0x144] ss:$16 sps:$4 sm:$0xff]   ;;  %v2387_v4 = vld [vmem:[#allocation5 + $0x140] ss:$16 sps:$4 sm:$0xff]   ;;  %v2812_v19 = vpack.c.bf16 %v84_v54, %v84_v54  ;;  %v2450_v55 = vld [vmem:[#allocation5 + $0x2c] ss:$16 sps:$4 sm:$0xff]  }
  0x50   :  { %1381 = vmatprep.subr.bf16.mxu1 %v2349_v29  ;;  %v2385_v2 = vld [vmem:[#allocation5 + $0x344] ss:$16 sps:$4 sm:$0xff]   ;;  %v2388_v5 = vld [vmem:[#allocation5 + $0x340] ss:$16 sps:$4 sm:$0xff]   ;;  %v108_v27 = vrot.slane %v94_v21, %v2797_v49  ;;  %v2750_v29 = vmov 0  }
  0x51   :  { %v2801_v62 = vpack.c.bf16 %v92_v59, %v92_v59  ;;  %v93_v63 = vcombine.high %v91_v60, %v91_v60  ;;  %v2389_v6 = vld [vmem:[#allocation5 + $0x124] ss:$16 sps:$4 sm:$0xff]   ;;  %v2393_v8 = vld [vmem:[#allocation5 + $0x120] ss:$16 sps:$4 sm:$0xff]   ;;  %v2814_v20 = vpack.c.bf16 %v91_v60, %v91_v60  ;;  %v2436_v49 = vld [vmem:[#allocation5 + $0x68] ss:$16 sps:$4 sm:$0xff]  }
  0x52   :  { %1341 = vmatpush1.bf16.msra.mxu0 %v2351_v30  ;;  %v2391_v7 = vld [vmem:[#allocation5 + $0x324] ss:$16 sps:$4 sm:$0xff]   ;;  %v2394_v9 = vld [vmem:[#allocation5 + $0x320] ss:$16 sps:$4 sm:$0xff]   ;;  %v2456_v59 = vld [vmem:[#allocation5 + $0xc] ss:$16 sps:$4 sm:$0xff]  }
  0x53   :  { %1382 = vmatpush1.bf16.msra.mxu1 %v2352_v31  ;;  %1342 = vmatprep.subr.bf16.mxu0 %v2353_v32  ;;  %v2803_v3 = vpack.c.bf16 %v93_v63, %v93_v63  ;;  %v2395_v10 = vld [vmem:[#allocation5 + $0x104] ss:$16 sps:$4 sm:$0xff]   ;;  %v2399_v14 = vld [vmem:[#allocation5 + $0x100] ss:$16 sps:$4 sm:$0xff]   ;;  %v2823_v31 = vpack.c.bf16 %v108_v27, %v108_v27  ;;  %v2411_v32 = vld [vmem:[#allocation5 + $0xe8] ss:$16 sps:$4 sm:$0xff]  }
  0x54   :  { %1383 = vmatprep.subr.bf16.mxu1 %v2355_v33  ;;  %1358 = vmatprep.mubr.bf16.mxu0 %v2801_v62  ;;  %v2397_v11 = vld [vmem:[#allocation5 + $0x304] ss:$16 sps:$4 sm:$0xff]   ;;  %v2400_v15 = vld [vmem:[#allocation5 + $0x300] ss:$16 sps:$4 sm:$0xff]   ;;  %v2462_v63 = vld [vmem:[#allocation5 + $0x1ec] ss:$16 sps:$4 sm:$0xff]  }
  0x55   :  { %1399 = vmatprep.mubr.bf16.mxu1 %v2803_v3  ;;  %v2404_v16 = vld [vmem:[#allocation5 + $0x4e4] ss:$16 sps:$4 sm:$0xff]   ;;  %v2402_v22 = vld [vmem:[#allocation5 + $0x4e0] ss:$16 sps:$4 sm:$0xff]   ;;  %v2484_v21 = vld [vmem:[#allocation5 + $0x168] ss:$16 sps:$4 sm:$0xff]  }
  0x56   :  { %1343 = vmatpush2.bf16.msra.mxu0 %v2357_v34  ;;  %v2407_v17 = vld [vmem:[#allocation5 + $0x604] ss:$16 sps:$4 sm:$0xff]   ;;  %v2405_v23 = vld [vmem:[#allocation5 + $0x600] ss:$16 sps:$4 sm:$0xff]   ;;  %v2420_v34 = vld [vmem:[#allocation5 + $0xcc] ss:$16 sps:$4 sm:$0xff]  }
  0x57   :  { %1384 = vmatpush2.bf16.msra.mxu1 %v2358_v35  ;;  %1344 = vmatprep.subr.bf16.mxu0 %v2359_v39  ;;  %v2410_v24 = vld [vmem:[#allocation5 + $0x4c4] ss:$16 sps:$4 sm:$0xff]   ;;  %v2408_v28 = vld [vmem:[#allocation5 + $0x4c0] ss:$16 sps:$4 sm:$0xff]  }
  0x58   :  { %1385 = vmatprep.subr.bf16.mxu1 %v2361_v40  ;;  %v2416_v30 = vld [vmem:[#allocation5 + $0x4a4] ss:$16 sps:$4 sm:$0xff]   ;;  %v2414_v33 = vld [vmem:[#allocation5 + $0x4a0] ss:$16 sps:$4 sm:$0xff]   ;;  %v2424_v40 = vld [vmem:[#allocation5 + $0xa8] ss:$16 sps:$4 sm:$0xff]  }
  0x59   :  { %v2423_v35 = vld [vmem:[#allocation5 + $0x484] ss:$16 sps:$4 sm:$0xff]   ;;  %v2421_v37 = vld [vmem:[#allocation5 + $0x480] ss:$16 sps:$4 sm:$0xff]  }
  0x5a   :  { %1345 = vmatpush2.bf16.msra.mxu0 %v2363_v41  ;;  %v2429_v39 = vld [vmem:[#allocation5 + $0x464] ss:$16 sps:$4 sm:$0xff]   ;;  %v2427_v41 = vld [vmem:[#allocation5 + $0x460] ss:$16 sps:$4 sm:$0xff]  }
  0x5b   :  { %1386 = vmatpush2.bf16.msra.mxu1 %v2364_v44  ;;  %1346 = vmatprep.subr.bf16.mxu0 %v2365_v45  ;;  %v2435_v44 = vld [vmem:[#allocation5 + $0x444] ss:$16 sps:$4 sm:$0xff]   ;;  %v2430_v45 = vld [vmem:[#allocation5 + $0x88] ss:$16 sps:$4 sm:$0xff]   ;;  %v2445_v54 = vld [vmem:[#allocation5 + $0x400] ss:$16 sps:$4 sm:$0xff]  }
  0x5c   :  { %1387 = vmatprep.subr.bf16.mxu1 %v2367_v46  ;;  %v2433_v46 = vld [vmem:[#allocation5 + $0x440] ss:$16 sps:$4 sm:$0xff]   ;;  %v2447_v52 = vld [vmem:[#allocation5 + $0x404] ss:$16 sps:$4 sm:$0xff]  }
  0x5d   :  { %v2459_v60 = vld [vmem:[#allocation5 + $0x5c4] ss:$16 sps:$4 sm:$0xff]   ;;  %v2493_v27 = vld [vmem:[#allocation5 + $0x500] ss:$16 sps:$4 sm:$0xff]  }
  0x5e   :  { %1347 = vmatpush2.bf16.msra.mxu0 %v2369_v47  ;;  %v2438_v47 = vld [vmem:[#allocation5 + $0x6c] ss:$16 sps:$4 sm:$0xff]   ;;  %v2489_v18 = vld [vmem:[#allocation5 + $0x524] ss:$16 sps:$4 sm:$0xff]  }
  0x5f   :  { %1388 = vmatpush2.bf16.msra.mxu1 %v2370_v48  ;;  %1348 = vmatprep.subr.bf16.mxu0 %v2371_v50  ;;  %v2441_v48 = vld [vmem:[#allocation5 + $0x424] ss:$16 sps:$4 sm:$0xff]   ;;  %v2439_v50 = vld [vmem:[#allocation5 + $0x420] ss:$16 sps:$4 sm:$0xff]  }
  0x60   :  { %1389 = vmatprep.subr.bf16.mxu1 %v2373_v51  ;;  %v2444_v51 = vld [vmem:[#allocation5 + $0x4c] ss:$16 sps:$4 sm:$0xff]  }
  0x62   :  { %1349 = vmatpush2.bf16.msra.mxu0 %v2375_v53  ;;  %v2442_v53 = vld [vmem:[#allocation5 + $0x48] ss:$16 sps:$4 sm:$0xff]  }
  0x63   :  { %1390 = vmatpush2.bf16.msra.mxu1 %v2376_v56  ;;  %1350 = vmatprep.subr.bf16.mxu0 %v2377_v57  ;;  %v2453_v56 = vld [vmem:[#allocation5 + $0x5e4] ss:$16 sps:$4 sm:$0xff]   ;;  %v2448_v57 = vld [vmem:[#allocation5 + $0x28] ss:$16 sps:$4 sm:$0xff]  }
  0x64   :  { %1391 = vmatprep.subr.bf16.mxu1 %v2379_v58  ;;  %v2451_v58 = vld [vmem:[#allocation5 + $0x5e0] ss:$16 sps:$4 sm:$0xff]  }
  0x66   :  { %1351 = vmatpush2.bf16.msra.mxu0 %v2381_v61  ;;  %v2454_v61 = vld [vmem:[#allocation5 + $0x8] ss:$16 sps:$4 sm:$0xff]  }
  0x67   :  { %1392 = vmatpush2.bf16.msra.mxu1 %v2382_v0  ;;  %1352 = vmatprep.subr.bf16.mxu0 %v2383_v1  ;;  %v2465_v0 = vld [vmem:[#allocation5 + $0x5a4] ss:$16 sps:$4 sm:$0xff]   ;;  %v2460_v1 = vld [vmem:[#allocation5 + $0x1e8] ss:$16 sps:$4 sm:$0xff]  }
  0x68   :  { %1393 = vmatprep.subr.bf16.mxu1 %v2385_v2  ;;  %v2463_v2 = vld [vmem:[#allocation5 + $0x5a0] ss:$16 sps:$4 sm:$0xff]  }
  0x6a   :  { %1353 = vmatpush2.bf16.msra.mxu0 %v2387_v4  ;;  %v2468_v4 = vld [vmem:[#allocation5 + $0x1cc] ss:$16 sps:$4 sm:$0xff]  }
  0x6b   :  { %1394 = vmatpush2.bf16.msra.mxu1 %v2388_v5  ;;  %1354 = vmatprep.subr.bf16.mxu0 %v2389_v6  ;;  %v2471_v5 = vld [vmem:[#allocation5 + $0x584] ss:$16 sps:$4 sm:$0xff]   ;;  %v2466_v6 = vld [vmem:[#allocation5 + $0x1c8] ss:$16 sps:$4 sm:$0xff]  }
  0x6c   :  { %1395 = vmatprep.subr.bf16.mxu1 %v2391_v7  ;;  %v2469_v7 = vld [vmem:[#allocation5 + $0x580] ss:$16 sps:$4 sm:$0xff]  }
  0x6e   :  { %1355 = vmatpush2.bf16.msra.mxu0 %v2393_v8  ;;  %v2474_v8 = vld [vmem:[#allocation5 + $0x1ac] ss:$16 sps:$4 sm:$0xff]  }
  0x6f   :  { %1396 = vmatpush2.bf16.msra.mxu1 %v2394_v9  ;;  %1356 = vmatprep.subr.bf16.mxu0 %v2395_v10  ;;  %v2477_v9 = vld [vmem:[#allocation5 + $0x564] ss:$16 sps:$4 sm:$0xff]   ;;  %v2472_v10 = vld [vmem:[#allocation5 + $0x1a8] ss:$16 sps:$4 sm:$0xff]  }
  0x70   :  { %1397 = vmatprep.subr.bf16.mxu1 %v2397_v11  ;;  %v2475_v11 = vld [vmem:[#allocation5 + $0x560] ss:$16 sps:$4 sm:$0xff]  }
  0x72   :  { %1357 = vmatpush2.bf16.msra.mxu0 %v2399_v14  ;;  %v2483_v14 = vld [vmem:[#allocation5 + $0x544] ss:$16 sps:$4 sm:$0xff]  }
  0x73   :  { %1398 = vmatpush2.bf16.msra.mxu1 %v2400_v15  ;;  %1408 = vmatprep.subr.bf16.mxu0 %v2404_v16  ;;  %v2478_v15 = vld [vmem:[#allocation5 + $0x188] ss:$16 sps:$4 sm:$0xff]   ;;  %v2481_v16 = vld [vmem:[#allocation5 + $0x540] ss:$16 sps:$4 sm:$0xff]  }
  0x74   :  { %1463 = vmatprep.subr.bf16.mxu1 %v2407_v17  ;;  %v2486_v17 = vld [vmem:[#allocation5 + $0x16c] ss:$16 sps:$4 sm:$0xff]  }
  0x75   :  { %1359 = vmatmul.mubr.bf16.vlgmr.msra.gmra.mxu0 %v2812_v19 }
  0x76   :  { %1400 = vmatmul.mubr.bf16.vlgmr.msra.gmra.mxu1 %v2814_v20  ;;  %1409 = vmatpush1.bf16.msra.mxu0 %v2402_v22  ;;  %v2487_v22 = vld [vmem:[#allocation5 + $0x520] ss:$16 sps:$4 sm:$0xff]  }
  0x77   :  { %1464 = vmatpush1.bf16.msra.mxu1 %v2405_v23  ;;  %1410 = vmatprep.subr.bf16.mxu0 %v2410_v24  ;;  %v2492_v23 = vld [vmem:[#allocation5 + $0x14c] ss:$16 sps:$4 sm:$0xff]   ;;  %v2495_v24 = vld [vmem:[#allocation5 + $0x504] ss:$16 sps:$4 sm:$0xff]  }
  0x78   :  { %1481 = vmatprep.mubr.bf16.mxu1 %v2750_v29  ;;  %1490 = vmatprep.subr.bf16.mxu1 %v2413_v25  ;;  %v2490_v25 = vld [vmem:[#allocation5 + $0x148] ss:$16 sps:$4 sm:$0xff]  }
  0x79   :  { %1440 = vmatprep.mubr.bf16.mxu0 %v2816_v26 }
  0x7a   :  { %1411 = vmatpush1.bf16.msra.mxu0 %v2408_v28  ;;  %v2498_v28 = vld [vmem:[#allocation5 + $0x12c] ss:$16 sps:$4 sm:$0xff]  }
  0x7b   :  { %1412 = vmatprep.subr.bf16.mxu0 %v2416_v30  ;;  %v2501_v30 = vld [vmem:[#allocation5 + $0x2ec] ss:$16 sps:$4 sm:$0xff]  }
  0x7e   :  { %2215 = vmatmul.mubr.msk.bf16.vlgmr.msra.gmra.mxu1 %vm1322_vm0, %v2823_v31  ;;  %1413 = vmatpush1.bf16.msra.mxu0 %v2414_v33  ;;  %v2496_v33 = vld [vmem:[#allocation5 + $0x128] ss:$16 sps:$4 sm:$0xff]  }
  0x7f   :  { %1491 = vmatpush1.bf16.msra.mxu1 %v2411_v32  ;;  %1414 = vmatprep.subr.bf16.mxu0 %v2423_v35  ;;  %v2830_v32 = vpack.c.bf16 %v2808_v13, %v2808_v13  ;;  %v2504_v35 = vld [vmem:[#allocation5 + $0x10c] ss:$16 sps:$4 sm:$0xff]   ;;  %v2508_v13 = vld [vmem:[#allocation5 + $0x4e8] ss:$16 sps:$4 sm:$0xff]  }
  0x80   :  { %1492 = vmatprep.subr.bf16.mxu1 %v2420_v34  ;;  %1522 = vmatprep.mubr.bf16.mxu1 %v2801_v62  ;;  %v2457_v62 = vld [vmem:[#allocation5 + $0x5c0] ss:$16 sps:$4 sm:$0xff]   ;;  %v2499_v34 = vld [vmem:[#allocation5 + $0x2e8] ss:$16 sps:$4 sm:$0xff]  }
  0x82   :  { %1415 = vmatpush1.bf16.msra.mxu0 %v2421_v37  ;;  %v2502_v37 = vld [vmem:[#allocation5 + $0x108] ss:$16 sps:$4 sm:$0xff]  }
  0x83   :  { %1493 = vmatpush1.bf16.msra.mxu1 %v2418_v36  ;;  %1416 = vmatprep.subr.bf16.mxu0 %v2429_v39  ;;  %v2507_v36 = vld [vmem:[#allocation5 + $0x2cc] ss:$16 sps:$4 sm:$0xff]  }
  0x84   :  { %1494 = vmatprep.subr.bf16.mxu1 %v2426_v38  ;;  %v2505_v38 = vld [vmem:[#allocation5 + $0x2c8] ss:$16 sps:$4 sm:$0xff]   ;;  %v2510_v39 = vld [vmem:[#allocation5 + $0x4ec] ss:$16 sps:$4 sm:$0xff]  }
  0x86   :  { %1417 = vmatpush1.bf16.msra.mxu0 %v2427_v41  ;;  %v2511_v41 = vld [vmem:[#allocation5 + $0x2a8] ss:$16 sps:$4 sm:$0xff]  }
  0x87   :  { %1495 = vmatpush1.bf16.msra.mxu1 %v2424_v40  ;;  %1418 = vmatprep.subr.bf16.mxu0 %v2435_v44  ;;  %v2513_v40 = vld [vmem:[#allocation5 + $0x2ac] ss:$16 sps:$4 sm:$0xff]  }
  0x88   :  { %1496 = vmatprep.subr.bf16.mxu1 %v2432_v42  ;;  %v2516_v42 = vld [vmem:[#allocation5 + $0x4cc] ss:$16 sps:$4 sm:$0xff]  }
  0x89   :  { %v2519_v44 = vld [vmem:[#allocation5 + $0x28c] ss:$16 sps:$4 sm:$0xff]  }
  0x8a   :  { %1419 = vmatpush1.bf16.msra.mxu0 %v2433_v46  ;;  %v2517_v46 = vld [vmem:[#allocation5 + $0x288] ss:$16 sps:$4 sm:$0xff]  }
  0x8b   :  { %1497 = vmatpush1.bf16.msra.mxu1 %v2430_v45  ;;  %1420 = vmatprep.subr.bf16.mxu0 %v2441_v48  ;;  %v2514_v45 = vld [vmem:[#allocation5 + $0x4c8] ss:$16 sps:$4 sm:$0xff]   ;;  %v2525_v48 = vld [vmem:[#allocation5 + $0x26c] ss:$16 sps:$4 sm:$0xff]  }
  0x8c   :  { %1498 = vmatprep.subr.bf16.mxu1 %v2438_v47  ;;  %v2522_v47 = vld [vmem:[#allocation5 + $0x4ac] ss:$16 sps:$4 sm:$0xff]  }
  0x8e   :  { %1421 = vmatpush1.bf16.msra.mxu0 %v2439_v50  ;;  %v2523_v50 = vld [vmem:[#allocation5 + $0x268] ss:$16 sps:$4 sm:$0xff]  }
  0x8f   :  { %1499 = vmatpush1.bf16.msra.mxu1 %v2436_v49  ;;  %1422 = vmatprep.subr.bf16.mxu0 %v2447_v52  ;;  %v2520_v49 = vld [vmem:[#allocation5 + $0x4a8] ss:$16 sps:$4 sm:$0xff]  }
  0x90   :  { %1500 = vmatprep.subr.bf16.mxu1 %v2444_v51  ;;  %v2531_v51 = vld [vmem:[#allocation5 + $0x24c] ss:$16 sps:$4 sm:$0xff]   ;;  %v2526_v52 = vld [vmem:[#allocation5 + $0x488] ss:$16 sps:$4 sm:$0xff]  }
  0x92   :  { %1423 = vmatpush1.bf16.msra.mxu0 %v2445_v54  ;;  %v2537_v54 = vld [vmem:[#allocation5 + $0x22c] ss:$16 sps:$4 sm:$0xff]  }
  0x93   :  { %1501 = vmatpush1.bf16.msra.mxu1 %v2442_v53  ;;  %1424 = vmatprep.subr.bf16.mxu0 %v2453_v56  ;;  %v2534_v53 = vld [vmem:[#allocation5 + $0x46c] ss:$16 sps:$4 sm:$0xff]   ;;  %v2535_v56 = vld [vmem:[#allocation5 + $0x228] ss:$16 sps:$4 sm:$0xff]  }
  0x94   :  { %1502 = vmatprep.subr.bf16.mxu1 %v2450_v55  ;;  %v2532_v55 = vld [vmem:[#allocation5 + $0x468] ss:$16 sps:$4 sm:$0xff]  }
  0x96   :  { %1425 = vmatpush2.bf16.msra.mxu0 %v2451_v58  ;;  %v2543_v58 = vld [vmem:[#allocation5 + $0x20c] ss:$16 sps:$4 sm:$0xff]  }
  0x97   :  { %1503 = vmatpush1.bf16.msra.mxu1 %v2448_v57  ;;  %1426 = vmatprep.subr.bf16.mxu0 %v2459_v60  ;;  %v2540_v57 = vld [vmem:[#allocation5 + $0x44c] ss:$16 sps:$4 sm:$0xff]  }
  0x98   :  { %1504 = vmatprep.subr.bf16.mxu1 %v2456_v59  ;;  %v2541_v59 = vld [vmem:[#allocation5 + $0x208] ss:$16 sps:$4 sm:$0xff]   ;;  %v2546_v60 = vld [vmem:[#allocation5 + $0x42c] ss:$16 sps:$4 sm:$0xff]  }
  0x9a   :  { %1427 = vmatpush2.bf16.msra.mxu0 %v2457_v62  ;;  %v2544_v62 = vld [vmem:[#allocation5 + $0x428] ss:$16 sps:$4 sm:$0xff]  }
  0x9b   :  { %1505 = vmatpush1.bf16.msra.mxu1 %v2454_v61  ;;  %1428 = vmatprep.subr.bf16.mxu0 %v2465_v0  ;;  %v2549_v61 = vld [vmem:[#allocation5 + $0x3ec] ss:$16 sps:$4 sm:$0xff]  }
  0x9c   :  { %1506 = vmatprep.subr.bf16.mxu1 %v2462_v63  ;;  %v2547_v63 = vld [vmem:[#allocation5 + $0x3e8] ss:$16 sps:$4 sm:$0xff]   ;;  %v2552_v0 = vld [vmem:[#allocation5 + $0x40c] ss:$16 sps:$4 sm:$0xff]  }
  0x9e   :  { %1429 = vmatpush2.bf16.msra.mxu0 %v2463_v2  ;;  %v2550_v2 = vld [vmem:[#allocation5 + $0x408] ss:$16 sps:$4 sm:$0xff]  }
  0x9f   :  { %1507 = vmatpush2.bf16.msra.mxu1 %v2460_v1  ;;  %1430 = vmatprep.subr.bf16.mxu0 %v2471_v5  ;;  %v2555_v1 = vld [vmem:[#allocation5 + $0x3cc] ss:$16 sps:$4 sm:$0xff]  }
  0xa0   :  { %1508 = vmatprep.subr.bf16.mxu1 %v2468_v4  ;;  %v2553_v4 = vld [vmem:[#allocation5 + $0x3c8] ss:$16 sps:$4 sm:$0xff]   ;;  %v2558_v5 = vld [vmem:[#allocation5 + $0x5ec] ss:$16 sps:$4 sm:$0xff]  }
  0xa2   :  { %1431 = vmatpush2.bf16.msra.mxu0 %v2469_v7  ;;  %v2556_v7 = vld [vmem:[#allocation5 + $0x5e8] ss:$16 sps:$4 sm:$0xff]  }
  0xa3   :  { %1509 = vmatpush2.bf16.msra.mxu1 %v2466_v6  ;;  %1432 = vmatprep.subr.bf16.mxu0 %v2477_v9  ;;  %v2561_v6 = vld [vmem:[#allocation5 + $0x3ac] ss:$16 sps:$4 sm:$0xff]  }
  0xa4   :  { %1510 = vmatprep.subr.bf16.mxu1 %v2474_v8  ;;  %v2559_v8 = vld [vmem:[#allocation5 + $0x3a8] ss:$16 sps:$4 sm:$0xff]   ;;  %v2564_v9 = vld [vmem:[#allocation5 + $0x5cc] ss:$16 sps:$4 sm:$0xff]  }
  0xa6   :  { %1433 = vmatpush2.bf16.msra.mxu0 %v2475_v11  ;;  %v2562_v11 = vld [vmem:[#allocation5 + $0x5c8] ss:$16 sps:$4 sm:$0xff]  }
  0xa7   :  { %1511 = vmatpush2.bf16.msra.mxu1 %v2472_v10  ;;  %1434 = vmatprep.subr.bf16.mxu0 %v2483_v14  ;;  %v2567_v10 = vld [vmem:[#allocation5 + $0x38c] ss:$16 sps:$4 sm:$0xff]  }
  0xa8   :  { %1512 = vmatprep.subr.bf16.mxu1 %v2480_v12  ;;  %v2565_v12 = vld [vmem:[#allocation5 + $0x388] ss:$16 sps:$4 sm:$0xff]   ;;  %v2570_v14 = vld [vmem:[#allocation5 + $0x5ac] ss:$16 sps:$4 sm:$0xff]  }
  0xaa   :  { %1435 = vmatpush2.bf16.msra.mxu0 %v2481_v16  ;;  %v2568_v16 = vld [vmem:[#allocation5 + $0x5a8] ss:$16 sps:$4 sm:$0xff]  }
  0xab   :  { %1513 = vmatpush2.bf16.msra.mxu1 %v2478_v15  ;;  %1436 = vmatprep.subr.bf16.mxu0 %v2489_v18  ;;  %v2573_v15 = vld [vmem:[#allocation5 + $0x36c] ss:$16 sps:$4 sm:$0xff]  }
  0xac   :  { %1514 = vmatprep.subr.bf16.mxu1 %v2486_v17  ;;  %v2571_v17 = vld [vmem:[#allocation5 + $0x368] ss:$16 sps:$4 sm:$0xff]   ;;  %v2576_v18 = vld [vmem:[#allocation5 + $0x58c] ss:$16 sps:$4 sm:$0xff]  }
  0xae   :  { %1437 = vmatpush2.bf16.msra.mxu0 %v2487_v22  ;;  %v2574_v22 = vld [vmem:[#allocation5 + $0x588] ss:$16 sps:$4 sm:$0xff]  }
  0xaf   :  { %1515 = vmatpush2.bf16.msra.mxu1 %v2484_v21  ;;  %1438 = vmatprep.subr.bf16.mxu0 %v2495_v24  ;;  %v2579_v21 = vld [vmem:[#allocation5 + $0x34c] ss:$16 sps:$4 sm:$0xff]  }
  0xb0   :  { %1516 = vmatprep.subr.bf16.mxu1 %v2492_v23  ;;  %v2577_v23 = vld [vmem:[#allocation5 + $0x348] ss:$16 sps:$4 sm:$0xff]   ;;  %v2582_v24 = vld [vmem:[#allocation5 + $0x56c] ss:$16 sps:$4 sm:$0xff]  }
  0xb2   :  { %1439 = vmatpush2.bf16.msra.mxu0 %v2493_v27  ;;  %v2580_v27 = vld [vmem:[#allocation5 + $0x568] ss:$16 sps:$4 sm:$0xff]  }
  0xb3   :  { %1517 = vmatpush2.bf16.msra.mxu1 %v2490_v25  ;;  %1531 = vmatprep.subr.bf16.mxu0 %v2501_v30  ;;  %v2585_v25 = vld [vmem:[#allocation5 + $0x32c] ss:$16 sps:$4 sm:$0xff]  }
  0xb4   :  { %1518 = vmatprep.subr.bf16.mxu1 %v2498_v28  ;;  %v2583_v28 = vld [vmem:[#allocation5 + $0x328] ss:$16 sps:$4 sm:$0xff]   ;;  %v2588_v30 = vld [vmem:[#allocation5 + $0x54c] ss:$16 sps:$4 sm:$0xff]  }
  0xb5   :  { %1441 = vmatmul.mubr.bf16.vlgmr.msra.gmra.mxu0 %v2830_v32 }
  0xb6   :  { %1532 = vmatpush1.bf16.msra.mxu0 %v2499_v34  ;;  %1563 = vmatprep.mubr.bf16.mxu0 %v2803_v3  ;;  %v2528_v3 = vld [vmem:[#allocation5 + $0x48c] ss:$16 sps:$4 sm:$0xff]   ;;  %v2586_v34 = vld [vmem:[#allocation5 + $0x548] ss:$16 sps:$4 sm:$0xff]  }
  0xb7   :  { %1519 = vmatpush2.bf16.msra.mxu1 %v2496_v33  ;;  %1533 = vmatprep.subr.bf16.mxu0 %v2507_v36  ;;  %v2591_v33 = vld [vmem:[#allocation5 + $0x30c] ss:$16 sps:$4 sm:$0xff]  }
  0xb8   :  { %1520 = vmatprep.subr.bf16.mxu1 %v2504_v35  ;;  %v2589_v35 = vld [vmem:[#allocation5 + $0x308] ss:$16 sps:$4 sm:$0xff]   ;;  %v2594_v36 = vld [vmem:[#allocation5 + $0x52c] ss:$16 sps:$4 sm:$0xff]  }
  0xba   :  { %1534 = vmatpush1.bf16.msra.mxu0 %v2505_v38  ;;  %v2592_v38 = vld [vmem:[#allocation5 + $0x528] ss:$16 sps:$4 sm:$0xff]  }
  0xbb   :  { %1521 = vmatpush2.bf16.msra.mxu1 %v2502_v37  ;;  %1535 = vmatprep.subr.bf16.mxu0 %v2513_v40  ;;  %v2597_v37 = vld [vmem:[#allocation5 + $0x60c] ss:$16 sps:$4 sm:$0xff]  }
  0xbc   :  { %1572 = vmatprep.subr.bf16.mxu1 %v2510_v39  ;;  %v2595_v39 = vld [vmem:[#allocation5 + $0x608] ss:$16 sps:$4 sm:$0xff]   ;;  %v2600_v40 = vld [vmem:[#allocation5 + $0x50c] ss:$16 sps:$4 sm:$0xff]  }
  0xbe   :  { %1523 = vmatmul.mubr.bf16.vlgmr.msra.gmra.mxu1 %v2812_v19  ;;  %1536 = vmatpush1.bf16.msra.mxu0 %v2511_v41  ;;  %v2529_v19 = vld [vmem:[#allocation5 + $0x248] ss:$16 sps:$4 sm:$0xff]  }
  0xbf   :  { %1573 = vmatpush1.bf16.msra.mxu1 %v2508_v13  ;;  %1537 = vmatprep.subr.bf16.mxu0 %v2519_v44  ;;  %v2601_v13 = vld [vmem:[#allocation8 + $0x78] sm:$0xff]   ;;  %v2598_v41 = vld [vmem:[#allocation5 + $0x508] ss:$16 sps:$4 sm:$0xff]  }
  0xc0   :  { %1574 = vmatprep.subr.bf16.mxu1 %v2516_v42  ;;  %1604 = vmatprep.mubr.bf16.mxu1 %v2816_v26  ;;  %v2538_v26 = vld [vmem:[#allocation5 + $0x448] ss:$16 sps:$4 sm:$0xff]   ;;  %v2602_v42 = vld [vmem:[#allocation8 + $0x38] sm:$0xff]  }
  0xc1   :  { %v2603_v44 = vld [vmem:[#allocation8 + $0x70] sm:$0xff]  }
  0xc2   :  { %1538 = vmatpush1.bf16.msra.mxu0 %v2517_v46  ;;  %v2605_v46 = vld [vmem:[#allocation8 + $0x68] sm:$0xff]  }
  0xc3   :  { %1575 = vmatpush1.bf16.msra.mxu1 %v2514_v45  ;;  %1539 = vmatprep.subr.bf16.mxu0 %v2525_v48  ;;  %v2604_v45 = vld [vmem:[#allocation8 + $0x30] sm:$0xff]   ;;  %v2617_v48 = vld [vmem:[#allocation8 + $0xf8] sm:$0xff]  }
  0xc4   :  { %1576 = vmatprep.subr.bf16.mxu1 %v2522_v47  ;;  %v2607_v47 = vld [vmem:[#allocation8 + $0x60] sm:$0xff]  }
  0xc6   :  { %1540 = vmatpush1.bf16.msra.mxu0 %v2523_v50  ;;  %v2608_v50 = vld [vmem:[#allocation8 + $0x20] sm:$0xff]  }
  0xc7   :  { %1577 = vmatpush1.bf16.msra.mxu1 %v2520_v49  ;;  %1541 = vmatprep.subr.bf16.mxu0 %v2531_v51  ;;  %v2618_v49 = vld [vmem:[#allocation8 + $0xb8] sm:$0xff]  }
  0xc8   :  { %1578 = vmatprep.subr.bf16.mxu1 %v2528_v3  ;;  %v2620_v3 = vld [vmem:[#allocation8 + $0xb0] sm:$0xff]   ;;  %v2610_v51 = vld [vmem:[#allocation8 + $0x18] sm:$0xff]  }
  0xca   :  { %1542 = vmatpush1.bf16.msra.mxu0 %v2529_v19  ;;  %v2611_v19 = vld [vmem:[#allocation8 + $0x50] sm:$0xff]  }
  0xcb   :  { %1579 = vmatpush1.bf16.msra.mxu1 %v2526_v52  ;;  %1543 = vmatprep.subr.bf16.mxu0 %v2537_v54  ;;  %v2622_v52 = vld [vmem:[#allocation8 + $0xa8] sm:$0xff]   ;;  %v2612_v54 = vld [vmem:[#allocation8 + $0x10] sm:$0xff]  }
  0xcc   :  { %1580 = vmatprep.subr.bf16.mxu1 %v2534_v53  ;;  %v2623_v53 = vld [vmem:[#allocation8 + $0xe0] sm:$0xff]  }
  0xce   :  { %1544 = vmatpush1.bf16.msra.mxu0 %v2535_v56  ;;  %v2613_v56 = vld [vmem:[#allocation8 + $0x48] sm:$0xff]  }
  0xcf   :  { %1581 = vmatpush1.bf16.msra.mxu1 %v2532_v55  ;;  %1545 = vmatprep.subr.bf16.mxu0 %v2543_v58  ;;  %v2624_v55 = vld [vmem:[#allocation8 + $0xa0] sm:$0xff]  }
  0xd0   :  { %1582 = vmatprep.subr.bf16.mxu1 %v2540_v57  ;;  %v2614_v57 = vld [vmem:[#allocation8 + $0x8] sm:$0xff]   ;;  %v2615_v58 = vld [vmem:[#allocation8 + $0x40] sm:$0xff]  }
  0xd2   :  { %1546 = vmatpush1.bf16.msra.mxu0 %v2541_v59 }
  0xd3   :  { %1583 = vmatpush1.bf16.msra.mxu1 %v2538_v26  ;;  %1547 = vmatprep.subr.bf16.mxu0 %v2549_v61  ;;  %v2616_v26 = vld [vmem:[#allocation8] sm:$0xff]   ;;  %v2625_v61 = vld [vmem:[#allocation8 + $0xd8] sm:$0xff]  }
  0xd4   :  { %1584 = vmatprep.subr.bf16.mxu1 %v2546_v60 }
  0xd6   :  { %1548 = vmatpush2.bf16.msra.mxu0 %v2547_v63 }
  0xd7   :  { %1585 = vmatpush1.bf16.msra.mxu1 %v2544_v62  ;;  %1549 = vmatprep.subr.bf16.mxu0 %v2555_v1  ;;  %v2626_v62 = vld [vmem:[#allocation8 + $0x98] sm:$0xff]  }
  0xd8   :  { %1586 = vmatprep.subr.bf16.mxu1 %v2552_v0 }
  0xda   :  { %1550 = vmatpush2.bf16.msra.mxu0 %v2553_v4  ;;  %v2627_v4 = vld [vmem:[#allocation8 + $0xd0] sm:$0xff]  }
  0xdb   :  { %1587 = vmatpush1.bf16.msra.mxu1 %v2550_v2  ;;  %1551 = vmatprep.subr.bf16.mxu0 %v2561_v6 }
  0xdc   :  { %1588 = vmatprep.subr.bf16.mxu1 %v2558_v5  ;;  %v2628_v5 = vld [vmem:[#allocation8 + $0x90] sm:$0xff]  }
  0xde   :  { %1552 = vmatpush2.bf16.msra.mxu0 %v2559_v8 }
  0xdf   :  { %1589 = vmatpush2.bf16.msra.mxu1 %v2556_v7  ;;  %1553 = vmatprep.subr.bf16.mxu0 %v2567_v10  ;;  %v2630_v10 = vld [vmem:[#allocation8 + $0x88] sm:$0xff]  }
  0xe0   :  { %1590 = vmatprep.subr.bf16.mxu1 %v2564_v9  ;;  %v2629_v9 = vld [vmem:[#allocation8 + $0xc8] sm:$0xff]  }
  0xe2   :  { %1554 = vmatpush2.bf16.msra.mxu0 %v2565_v12 }
  0xe3   :  { %1591 = vmatpush2.bf16.msra.mxu1 %v2562_v11  ;;  %1555 = vmatprep.subr.bf16.mxu0 %v2573_v15  ;;  %v2632_v15 = vld [vmem:[#allocation8 + $0x80] sm:$0xff]  }
  0xe4   :  { %1592 = vmatprep.subr.bf16.mxu1 %v2570_v14  ;;  %v2631_v14 = vld [vmem:[#allocation8 + $0xc0] sm:$0xff]  }
  0xe6   :  { %1556 = vmatpush2.bf16.msra.mxu0 %v2571_v17  ;;  %v324_v17 = vsub.s32 0, %v2794_v43 }
  0xe7   :  { %1593 = vmatpush2.bf16.msra.mxu1 %v2568_v16  ;;  %1557 = vmatprep.subr.bf16.mxu0 %v2579_v21  ;;  %v328_v21 = vsub.s32 1, %v2794_v43 }
  0xe8   :  { %1594 = vmatprep.subr.bf16.mxu1 %v2576_v18  ;;  %v320_v18 = vld [vmem:[#allocation7] sm:$0xf] }
  0xea   :  { %1558 = vmatpush2.bf16.msra.mxu0 %v2577_v23  ;;  %v329_v23 = vrot.slane %v320_v18, %v328_v21 }
  0xeb   :  { %1595 = vmatpush2.bf16.msra.mxu1 %v2574_v22  ;;  %1559 = vmatprep.subr.bf16.mxu0 %v2585_v25  ;;  %v325_v22 = vrot.slane %v320_v18, %v324_v17 }
  0xec   :  { %1596 = vmatprep.subr.bf16.mxu1 %v2582_v24 }
  0xee   :  { %1560 = vmatpush2.bf16.msra.mxu0 %v2583_v28 }
  0xef   :  { %1597 = vmatpush2.bf16.msra.mxu1 %v2580_v27  ;;  %1561 = vmatprep.subr.bf16.mxu0 %v2591_v33 }
  0xf0   :  { %1598 = vmatprep.subr.bf16.mxu1 %v2588_v30 }
  0xf2   :  { %1562 = vmatpush2.bf16.msra.mxu0 %v2589_v35 }
  0xf3   :  { %1599 = vmatpush2.bf16.msra.mxu1 %v2586_v34  ;;  %1627 = vmatprep.subr.bf16.mxu0 %v2597_v37 }
  0xf4   :  { %1600 = vmatprep.subr.bf16.mxu1 %v2594_v36 }
  0xf5   :  { %1564 = vmatmul.mubr.bf16.vlgmr.msra.gmra.mxu0 %v2814_v20  ;;  %v2606_v20 = vld [vmem:[#allocation8 + $0x28] sm:$0xff]  }
  0xf6   :  { %1628 = vmatpush1.bf16.msra.mxu0 %v2595_v39  ;;  %1645 = vmatprep.mubr.bf16.mxu0 %v2750_v29  ;;  %v2619_v29 = vld [vmem:[#allocation8 + $0xf0] sm:$0xff]  }
  0xf7   :  { %1601 = vmatpush2.bf16.msra.mxu1 %v2592_v38  ;;  %2250 = vmatprep.subr.bf16.mxu0 %v2601_v13 }
  0xf8   :  { %1602 = vmatprep.subr.bf16.mxu1 %v2600_v40 }
  0xfb   :  { %1603 = vmatpush2.bf16.msra.mxu1 %v2598_v41 }
  0xfc   :  { %2272 = vmatprep.subr.bf16.mxu1 %v2617_v48 }
  0xfd   :  { %2216 = vmatmul.mubr.msk.bf16.vlgmr.msra.gmra.mxu0 %vm1322_vm0, %v2823_v31  ;;  %v2621_v31 = vld [vmem:[#allocation8 + $0xe8] sm:$0xff]  }
  0xfe   :  { %1605 = vmatmul.mubr.bf16.vlgmr.msra.gmra.mxu1 %v2830_v32  ;;  %2251 = vmatpush3.bf16.msra.mxu0 %v2602_v42  ;;  %v2609_v32 = vld [vmem:[#allocation8 + $0x58] sm:$0xff]  }
  0xff   :  { %2252 = vmatprep.subr.bf16.mxu0 %v2603_v44  ;;  %2273 = vmatpush3.bf16.msra.mxu1 %v2618_v49 }
 0x100   :  { %2274 = vmatprep.subr.bf16.mxu1 %v2619_v29 }
 0x102   :  { %2253 = vmatpush3.bf16.msra.mxu0 %v2604_v45 }
 0x103   :  { %2254 = vmatprep.subr.bf16.mxu0 %v2605_v46  ;;  %2275 = vmatpush3.bf16.msra.mxu1 %v2620_v3  ;;  %v332_v46 = vsub.s32 2, %v2794_v43 }
 0x104   :  { %2276 = vmatprep.subr.bf16.mxu1 %v2621_v31 }
 0x105   :  { %v333_v48 = vrot.slane %v320_v18, %v332_v46 }
 0x106   :  { %2255 = vmatpush3.bf16.msra.mxu0 %v2606_v20  ;;  %v336_v20 = vsub.s32 3, %v2794_v43 }
 0x107   :  { %2256 = vmatprep.subr.bf16.mxu0 %v2607_v47  ;;  %2277 = vmatpush3.bf16.msra.mxu1 %v2622_v52 }
 0x108   :  { %2278 = vmatprep.subr.bf16.mxu1 %v2623_v53  ;;  %v337_v29 = vrot.slane %v320_v18, %v336_v20 }
 0x10a   :  { %2257 = vmatpush3.bf16.msra.mxu0 %v2608_v50 }
 0x10b   :  { %2258 = vmatprep.subr.bf16.mxu0 %v2609_v32  ;;  %2279 = vmatpush3.bf16.msra.mxu1 %v2624_v55 }
 0x10c   :  { %2280 = vmatprep.subr.bf16.mxu1 %v2625_v61 }
 0x10e   :  { %2259 = vmatpush3.bf16.msra.mxu0 %v2610_v51 }
 0x10f   :  { %2260 = vmatprep.subr.bf16.mxu0 %v2611_v19  ;;  %2281 = vmatpush3.bf16.msra.mxu1 %v2626_v62 }
 0x110   :  { %2282 = vmatprep.subr.bf16.mxu1 %v2627_v4 }
 0x112   :  { %2261 = vmatpush3.bf16.msra.mxu0 %v2612_v54 }
 0x113   :  { %2262 = vmatprep.subr.bf16.mxu0 %v2613_v56  ;;  %2283 = vmatpush3.bf16.msra.mxu1 %v2628_v5 }
 0x114   :  { %2284 = vmatprep.subr.bf16.mxu1 %v2629_v9 }
 0x116   :  { %2263 = vmatpush3.bf16.msra.mxu0 %v2614_v57 }
 0x117   :  { %2264 = vmatprep.subr.bf16.mxu0 %v2615_v58  ;;  %2285 = vmatpush3.bf16.msra.mxu1 %v2630_v10 }
 0x118   :  { %2286 = vmatprep.subr.bf16.mxu1 %v2631_v14 }
 0x11a   :  { %2265 = vmatpush3.bf16.msra.mxu0 %v2616_v26 }
 0x11b   :  { %2287 = vmatpush3.bf16.msra.mxu1 %v2632_v15 }
 0x135   :  { %v1360_v59 = vpop.f32.mrf.mxu0 }
 0x136   :  { %v1401_v60 = vpop.f32.mrf.mxu1  ;;  %v1361_v24 = vadd.f32 %v1360_v59, %v325_v22 }
 0x137   :  { %v1362_v63 = vpop.f32.mrf.mxu0 }
 0x138   :  { %v1403_v0 = vpop.f32.mrf.mxu1  ;;  %v1363_v25 = vadd.f32 %v1362_v63, %v329_v23  ;;  %v1402_v27 = vadd.f32 %v1401_v60, %v1361_v24 }
 0x139   :  { %v1364_v1 = vpop.f32.mrf.mxu0 }
 0x13a   :  { %v1405_v2 = vpop.f32.mrf.mxu1  ;;  %v1404_v30 = vadd.f32 %v1403_v0, %v1363_v25 }
 0x13b   :  { %v1365_v6 = vpop.f32.mrf.mxu0 }
 0x13c   :  { %v1406_v7 = vpop.f32.mrf.mxu1  ;;  %v2217_v6 = vld [vmem:[%s2855_s4] ss:$0 sm:$0xff] }
 0x13e   :  { %v1483_v8 = vpop.f32.mrf.mxu1 }
 0x140   :  { %v1485_v11 = vpop.f32.mrf.mxu1 }
 0x142   :  { %v1487_v12 = vpop.f32.mrf.mxu1 }
 0x144   :  { %v1488_v16 = vpop.f32.mrf.mxu1 }
 0x175   :  { %v1442_v28 = vpop.f32.mrf.mxu0 }
 0x176   :  { %v1443_v33 = vadd.f32 %v1442_v28, %v1402_v27 }
 0x177   :  { %v1444_v34 = vpop.f32.mrf.mxu0 }
 0x178   :  { %v1445_v35 = vadd.f32 %v1444_v34, %v1404_v30  ;;  %v1484_v36 = vadd.f32 %v1483_v8, %v1443_v33 }
 0x179   :  { %v1446_v37 = vpop.f32.mrf.mxu0 }
 0x17a   :  { %v1486_v38 = vadd.f32 %v1485_v11, %v1445_v35  ;;  %v1654_v13 = vpack.c.bf16 %v1484_v36, %v1484_v36 }
 0x17b   :  { %v1447_v39 = vpop.f32.mrf.mxu0 }
 0x17c   :  { %v1655_v40 = vpack.c.bf16 %v1486_v38, %v1486_v38 }
 0x17e   :  { %v1524_v41 = vpop.f32.mrf.mxu1  ;;  %1953 = vmatprep.mubr.bf16.mxu0 %v1655_v40 }
 0x17f   :  { %1954 = vmatmul.mubr.bf16.vlgmr.msra.gmra.mxu0 %v1654_v13  ;;  %v1525_v3 = vadd.f32 %v1524_v41, %v333_v48 }
 0x180   :  { %v1526_v42 = vpop.f32.mrf.mxu1 }
 0x181   :  { %v1527_v31 = vadd.f32 %v1526_v42, %v337_v29 }
 0x182   :  { %v1528_v44 = vpop.f32.mrf.mxu1 }
 0x184   :  { %v1529_v45 = vpop.f32.mrf.mxu1 }
 0x1b5   :  { %v1565_v47 = vpop.f32.mrf.mxu0 }
 0x1b6   :  { %v1566_v51 = vadd.f32 %v1565_v47, %v1525_v3 }
 0x1b7   :  { %v1567_v49 = vpop.f32.mrf.mxu0 }
 0x1b8   :  { %v1568_v53 = vadd.f32 %v1567_v49, %v1527_v31 }
 0x1b9   :  { %v1569_v50 = vpop.f32.mrf.mxu0 }
 0x1bb   :  { %v1570_v32 = vpop.f32.mrf.mxu0 }
 0x1bd   :  { %v1647_v19 = vpop.f32.mrf.mxu0 }
 0x1be   :  { %v1606_v52 = vpop.f32.mrf.mxu1 }
 0x1bf   :  { %v1607_v54 = vadd.f32 %v1606_v52, %v1566_v51  ;;  %v1649_v56 = vpop.f32.mrf.mxu0 }
 0x1c0   :  { %v1608_v55 = vpop.f32.mrf.mxu1 }
 0x1c1   :  { %v1609_v57 = vadd.f32 %v1608_v55, %v1568_v53  ;;  %v1648_v58 = vadd.f32 %v1647_v19, %v1607_v54  ;;  %v1651_v59 = vpop.f32.mrf.mxu0 }
 0x1c2   :  { %v1610_v26 = vpop.f32.mrf.mxu1 }
 0x1c3   :  { %v1650_v43 = vadd.f32 %v1649_v56, %v1609_v57  ;;  %v1652_v61 = vpop.f32.mrf.mxu0  ;;  %v1656_v63 = vpack.c.bf16 %v1648_v58, %v1648_v58 }
 0x1c4   :  { %v1611_v60 = vpop.f32.mrf.mxu1 }
 0x1c5   :  { %v1657_v62 = vpack.c.bf16 %v1650_v43, %v1650_v43 }
 0x1c7   :  { %1993 = vmatprep.mubr.bf16.mxu1 %v1657_v62 }
 0x1c8   :  { %1994 = vmatmul.mubr.bf16.vlgmr.msra.gmra.mxu1 %v1656_v63 }
 0x23f   :  { %v2266_v0 = vpop.f32.mrf.mxu0 }
 0x241   :  { %v2267_v1 = vpop.f32.mrf.mxu0 }
 0x242   :  { %v2268_v2 = vadd.f32 %v2267_v1, %v2266_v0 }
 0x243   :  { %v2269_v4 = vpop.f32.mrf.mxu0 }
 0x244   :  { %v1956_v9 = vadd.f32 %v2268_v2, %v2217_v6 }
 0x245   :  { %v2270_v5 = vpop.f32.mrf.mxu0 }
 0x288   :  { %v2288_v7 = vpop.f32.mrf.mxu1 }
 0x28a   :  { %v2289_v8 = vpop.f32.mrf.mxu1 }
 0x28b   :  { %v2290_v10 = vadd.f32 %v2289_v8, %v2288_v7 }
 0x28c   :  { %v2291_v11 = vpop.f32.mrf.mxu1 }
 0x28d   :  { %v1996_v12 = vadd.f32 %v2290_v10, %v1956_v9 }
 0x28e   :  { %v2292_v14 = vpop.f32.mrf.mxu1 }
 0x28f   :  { %2001 = vst [vmem:[#allocation10] sm:$0x3] %v1996_v12 }
 0x290   :  { %2724 = shalt.err (!%p2721_p10)
}
 0x291   :  { %2011 = dma.vmem_to_hbm [thread:$0]  %s2009_s16, 32, %s2856_s5, [#allocation4]  }
 0x292   :  { %2739 = dma.done.wait [#allocation4], 32  }
 0x293   :  { %2740 = vsyncadd [#allocation4], 4294967264 }
 0x294   :  { %2015 = vsyncpa [#allocation3], 1 }
 0x295   :  { %2016 = vsyncpa [#allocation6], 1 }
 0x296   :  { %2017 = vsyncpa [#allocation9], 1 }
 0x297   :  { %2018 = vsyncpa [#allocation4], 1 }

</bundles_post_ra>
